<compile_context>
chip_gen: v7x
topology: tpu7x:2x2x1
jax: 0.10.0
libtpu: 0.0.40
codegen_flags: <defaults>
</compile_context>

<pallas_src>
import math

import jax
import jax.numpy as jnp
from jax import lax
from jax.experimental import pallas as pl
from jax.experimental.pallas import tpu as pltpu

# ---- problem sizes (module args: input_size, num_heads, Seq_len, embedding_size) ----
BATCH = 2
SEQ = 8          # Seq_len
D_IN = 16        # input_size
EMB = 32         # embedding_size
NUM_HEADS = 4
HEAD_DIM = EMB // NUM_HEADS
BS = BATCH * SEQ                     # rows processed in the single grid step
SCALE = 1.0 / math.sqrt(HEAD_DIM)


def _mha_kernel(x_ref, wqkv_t_ref, bqkv_t_ref, wo_ref, bo_ref, mask_ref, o_ref):
    """Single grid step over the whole [B*S, D_IN] slab (weights pre-folded)."""
    x = x_ref[...]                                                     # [BS, D_IN]

    # Fused QKV projection, computed transposed: qkv_t[e, n] = (x @ Wqkv)[n, e] + b[e].
    # Contracting dim 1 of BOTH operands: neither operand needs an explicit transpose.
    qkv_t = lax.dot_general(
        wqkv_t_ref[...], x,                                            # [3E, D_IN], [BS, D_IN]
        dimension_numbers=(((1,), (1,)), ((), ())),
        preferred_element_type=jnp.float32) + bqkv_t_ref[...]          # [3E, BS]

    # Head split: free, vreg-aligned sublane reshapes (no lane slicing).
    q_t = qkv_t[0 * EMB:1 * EMB, :].reshape(NUM_HEADS, HEAD_DIM, BS)   # Q pre-scaled
    k_t = qkv_t[1 * EMB:2 * EMB, :].reshape(NUM_HEADS, HEAD_DIM, BS)
    v_t = qkv_t[2 * EMB:3 * EMB, :].reshape(NUM_HEADS, HEAD_DIM, BS)

    # All-head scores in one batched contraction: s[h, q, k].
    s = jnp.einsum('hdq,hdk->hqk', q_t, k_t,
                   preferred_element_type=jnp.float32)                 # [H, BS, BS]
    s = s + mask_ref[...]                                              # block-diag batch mask

    # One batched softmax pass over all heads; EUP approx reciprocal (free slot).
    s = s - jnp.max(s, axis=-1, keepdims=True)
    p = jnp.exp(s)
    p = p * pl.reciprocal(jnp.sum(p, axis=-1, keepdims=True), approx=True)

    # PV, still head-major / transposed: o_t[h, d, q] = sum_k p[h, q, k] * v_t[h, d, k].
    o_t = jnp.einsum('hdk,hqk->hdq', v_t, p,
                     preferred_element_type=jnp.float32)               # [H, HD, BS]

    # "concat heads + out-projection" as ONE matmul: the reshape is a free sublane
    # merge, and contracting dim 0 of both operands yields the lane-dense
    # [BS, EMB] result directly (no transpose, no per-head accumulation).
    o_cat_t = o_t.reshape(EMB, BS)                                     # [EMB, BS]
    out = lax.dot_general(
        o_cat_t, wo_ref[...],                                          # [EMB, BS], [EMB, EMB]
        dimension_numbers=(((0,), (0,)), ((), ())),
        preferred_element_type=jnp.float32) + bo_ref[...]              # [BS, EMB]

    # Final softmax over the embedding axis (module's F.softmax(..., -1)), exact.
    out = out - jnp.max(out, axis=-1, keepdims=True)
    e = jnp.exp(out)
    o_ref[...] = e * pl.reciprocal(jnp.sum(e, axis=-1, keepdims=True), approx=False)


def multihead_module_forward(x, fp):
    """x: [B, S, D_IN] float32.  fp: folded/fused params (see fold_params)."""
    B, S, Din = x.shape
    assert (B, S, Din) == (BATCH, SEQ, D_IN)
    x2d = x.reshape(B * S, Din)

    in_specs = [
        pl.BlockSpec((BS, D_IN), lambda i: (0, 0)),           # x (flattened batch*seq)
        pl.BlockSpec((3 * EMB, D_IN), lambda i: (0, 0)),      # fused QKV weight (transposed)
        pl.BlockSpec((3 * EMB, 1), lambda i: (0, 0)),         # fused QKV bias (column)
        pl.BlockSpec((EMB, EMB), lambda i: (0, 0)),           # out-proj weight, (in, out)
        pl.BlockSpec((1, EMB), lambda i: (0, 0)),             # out-proj bias (row)
        pl.BlockSpec((BS, BS), lambda i: (0, 0)),             # block-diagonal batch mask
    ]

    out2d = pl.pallas_call(
        _mha_kernel,
        out_shape=jax.ShapeDtypeStruct((BS, EMB), jnp.float32),
        grid_spec=pltpu.PrefetchScalarGridSpec(
            num_scalar_prefetch=0,
            grid=(1,),                                        # single step: no per-B overhead
            in_specs=in_specs,
            out_specs=pl.BlockSpec((BS, EMB), lambda i: (0, 0)),
        ),
        compiler_params=pltpu.CompilerParams(
            dimension_semantics=("arbitrary",)),
    )(x2d, fp["w_qkv_t"], fp["b_qkv_t"], fp["wo"], fp["bo"], fp["mask"])

    return out2d.reshape(B, S, EMB)


# ------------------------- parameters ---------------------------------------

def init_raw_params(key):
    """PyTorch-Linear-style weights, stored pre-transposed to (in, out)."""
    ks = jax.random.split(key, 14)

    def lin(kw, kb, fan_in, fan_out):
        bound = 1.0 / math.sqrt(fan_in)
        w = jax.random.uniform(kw, (fan_out, fan_in), jnp.float32, -bound, bound)
        b = jax.random.uniform(kb, (fan_out,), jnp.float32, -bound, bound)
        return w.T, b                                         # (in, out), (out,)

    wq, bq = lin(ks[0], ks[1], D_IN, EMB)
    wk, bk = lin(ks[2], ks[3], D_IN, EMB)
    wv, bv = lin(ks[4], ks[5], D_IN, EMB)
    wiq, biq = lin(ks[6], ks[7], EMB, EMB)
    wik, bik = lin(ks[8], ks[9], EMB, EMB)
    wiv, biv = lin(ks[10], ks[11], EMB, EMB)
    wo, bo = lin(ks[12], ks[13], EMB, EMB)
    return dict(wq=wq, bq=bq, wk=wk, bk=bk, wv=wv, bv=bv,
                wiq=wiq, biq=biq, wik=wik, bik=bik, wiv=wiv, biv=biv,
                wo=wo, bo=bo)


def fold_params(p):
    """Exact host-side algebraic folding: q/k/v_net into the MHA in-projection,
    attention scale into Q, fusion into one transposed QKV slab, plus the
    precomputed block-diagonal batch mask."""
    wq_m = (p["wq"] @ p["wiq"]) * SCALE
    bq_m = (p["bq"] @ p["wiq"] + p["biq"]) * SCALE
    wk_m = p["wk"] @ p["wik"]
    bk_m = p["bk"] @ p["wik"] + p["bik"]
    wv_m = p["wv"] @ p["wiv"]
    bv_m = p["bv"] @ p["wiv"] + p["biv"]
    w_qkv_t = jnp.concatenate([wq_m, wk_m, wv_m], axis=1).T              # (3*EMB, D_IN)
    b_qkv_t = jnp.concatenate([bq_m, bk_m, bv_m]).reshape(3 * EMB, 1)    # (3*EMB, 1)
    # Block-diagonal additive mask: -inf for cross-batch (query, key) pairs.
    row_b = jnp.arange(BS, dtype=jnp.int32)[:, None] // SEQ
    col_b = jnp.arange(BS, dtype=jnp.int32)[None, :] // SEQ
    mask = jnp.where(row_b == col_b, 0.0, -1e30).astype(jnp.float32)     # (BS, BS)
    return dict(w_qkv_t=w_qkv_t, b_qkv_t=b_qkv_t,
                wo=p["wo"], bo=p["bo"].reshape(1, EMB), mask=mask)


# ------------------------- pure-JAX reference (unfolded, mirrors PyTorch) ----

def reference_forward(x, p):
    q = x @ p["wq"] + p["bq"]
    k = x @ p["wk"] + p["bk"]
    v = x @ p["wv"] + p["bv"]
    q2 = q @ p["wiq"] + p["biq"]
    k2 = k @ p["wik"] + p["bik"]
    v2 = v @ p["wiv"] + p["biv"]
    B = x.shape[0]
    q2 = q2.reshape(B, SEQ, NUM_HEADS, HEAD_DIM).transpose(0, 2, 1, 3)
    k2 = k2.reshape(B, SEQ, NUM_HEADS, HEAD_DIM).transpose(0, 2, 1, 3)
    v2 = v2.reshape(B, SEQ, NUM_HEADS, HEAD_DIM).transpose(0, 2, 1, 3)
    s = jnp.einsum("bhqd,bhkd->bhqk", q2, k2) / math.sqrt(HEAD_DIM)
    p_attn = jax.nn.softmax(s, axis=-1)
    o = jnp.einsum("bhqk,bhkd->bhqd", p_attn, v2)
    o = o.transpose(0, 2, 1, 3).reshape(B, SEQ, EMB)
    o = o @ p["wo"] + p["bo"]
    return jax.nn.softmax(o, axis=-1)


if __name__ == "__main__":
    key = jax.random.PRNGKey(0)
    kx, kp = jax.random.split(key)
    x = jax.random.normal(kx, (BATCH, SEQ, D_IN), jnp.float32)

    raw = init_raw_params(kp)
    folded = fold_params(raw)

    out = multihead_module_forward(x, folded)
    out = jax.block_until_ready(out)

    ref = reference_forward(x, raw)
    assert out.shape == (BATCH, SEQ, EMB)
    # Tolerance relaxed from 1e-5 only because of the EUP approx reciprocal in the
    # attention-softmax denominator (sanctioned by the perf review); all other math
    # is exact algebraic refactoring.
    assert jnp.allclose(out, ref, atol=1e-2, rtol=1e-2)
    print("KERNEL_OK")
</pallas_src>

<mosaic_0001>
module attributes {stable_mosaic.version = 11 : i64} {
  func.func @_mha_kernel(%arg0: i32, %arg1: memref<16x16xf32, #tpu.memory_space<vmem>>, %arg2: memref<96x16xf32, #tpu.memory_space<vmem>>, %arg3: memref<96x1xf32, #tpu.memory_space<vmem>>, %arg4: memref<32x32xf32, #tpu.memory_space<vmem>>, %arg5: memref<1x32xf32, #tpu.memory_space<vmem>>, %arg6: memref<16x16xf32, #tpu.memory_space<vmem>>, %arg7: memref<16x32xf32, #tpu.memory_space<vmem>>) attributes {dimension_semantics = [#tpu.dimension_semantics<arbitrary>], iteration_bounds = array<i64: 1>, scalar_prefetch = 0 : i64, scratch_operands = 0 : i64, tpu.core_type = #tpu.core_type<tc>, window_params = [{pipeline_mode = #tpu.pipeline_mode<synchronous>, transform_indices = @transform_0, window_bounds = array<i64: 16, 16>}, {pipeline_mode = #tpu.pipeline_mode<synchronous>, transform_indices = @transform_1, window_bounds = array<i64: 96, 16>}, {pipeline_mode = #tpu.pipeline_mode<synchronous>, transform_indices = @transform_2, window_bounds = array<i64: 96, 1>}, {pipeline_mode = #tpu.pipeline_mode<synchronous>, transform_indices = @transform_3, window_bounds = array<i64: 32, 32>}, {pipeline_mode = #tpu.pipeline_mode<synchronous>, transform_indices = @transform_4, window_bounds = array<i64: 1, 32>}, {pipeline_mode = #tpu.pipeline_mode<synchronous>, transform_indices = @transform_5, window_bounds = array<i64: 16, 16>}, {pipeline_mode = #tpu.pipeline_mode<synchronous>, transform_indices = @transform_6, window_bounds = array<i64: 16, 32>}]} {
    %c0 = arith.constant 0 : index
    %c0_0 = arith.constant 0 : index
    %0 = vector.load %arg1[%c0, %c0_0] : memref<16x16xf32, #tpu.memory_space<vmem>>, vector<16x16xf32>
    %c0_1 = arith.constant 0 : index
    %c0_2 = arith.constant 0 : index
    %1 = vector.load %arg2[%c0_1, %c0_2] : memref<96x16xf32, #tpu.memory_space<vmem>>, vector<96x16xf32>
    %cst = arith.constant dense<0.000000e+00> : vector<96x16xf32>
    %2 = tpu.matmul %1, %0, %cst {dimension_numbers = #tpu.dot_dimension_numbers<[1], [1], [0], [0], [0, 0, 1, 0], [], []>} : vector<96x16xf32>, vector<16x16xf32>, vector<96x16xf32> -> vector<96x16xf32>
    %c0_3 = arith.constant 0 : index
    %c0_4 = arith.constant 0 : index
    %3 = vector.load %arg3[%c0_3, %c0_4] : memref<96x1xf32, #tpu.memory_space<vmem>>, vector<96x1xf32>
    %4 = vector.broadcast %3 : vector<96x1xf32> to vector<96x16xf32>
    %5 = arith.addf %2, %4 : vector<96x16xf32>
    %6 = vector.extract_strided_slice %5 {offsets = [0, 0], sizes = [32, 16], strides = [1, 1]} : vector<96x16xf32> to vector<32x16xf32>
    %7 = vector.shape_cast %6 : vector<32x16xf32> to vector<4x8x16xf32>
    %8 = vector.extract_strided_slice %5 {offsets = [32, 0], sizes = [32, 16], strides = [1, 1]} : vector<96x16xf32> to vector<32x16xf32>
    %9 = vector.shape_cast %8 : vector<32x16xf32> to vector<4x8x16xf32>
    %10 = vector.extract_strided_slice %5 {offsets = [64, 0], sizes = [32, 16], strides = [1, 1]} : vector<96x16xf32> to vector<32x16xf32>
    %11 = vector.shape_cast %10 : vector<32x16xf32> to vector<4x8x16xf32>
    "tpu.trace_start"() <{level = 10 : i32, message = "hdq,hdk->hqk"}> : () -> ()
    %cst_5 = arith.constant dense<0.000000e+00> : vector<4x16x16xf32>
    %12 = tpu.matmul %7, %9, %cst_5 {dimension_numbers = #tpu.dot_dimension_numbers<[1], [1], [2], [2], [0, 0, 0, 2, 1, 2], [0], [0]>} : vector<4x8x16xf32>, vector<4x8x16xf32>, vector<4x16x16xf32> -> vector<4x16x16xf32>
    "tpu.trace_stop"() : () -> ()
    %c0_6 = arith.constant 0 : index
    %c0_7 = arith.constant 0 : index
    %13 = vector.load %arg6[%c0_6, %c0_7] : memref<16x16xf32, #tpu.memory_space<vmem>>, vector<16x16xf32>
    %14 = vector.shape_cast %13 : vector<16x16xf32> to vector<1x16x16xf32>
    %15 = vector.broadcast %14 : vector<1x16x16xf32> to vector<4x16x16xf32>
    %16 = arith.addf %12, %15 : vector<4x16x16xf32>
    %cst_8 = arith.constant dense<0xFF800000> : vector<4x16xf32>
    %17 = vector.multi_reduction <maximumf>, %16, %cst_8 [2] : vector<4x16x16xf32> to vector<4x16xf32>
    %18 = vector.shape_cast %17 : vector<4x16xf32> to vector<4x16x1xf32>
    %19 = vector.broadcast %18 : vector<4x16x1xf32> to vector<4x16x16xf32>
    %20 = arith.subf %16, %19 : vector<4x16x16xf32>
    %21 = math.exp %20 : vector<4x16x16xf32>
    %cst_9 = arith.constant dense<0.000000e+00> : vector<4x16xf32>
    %22 = vector.multi_reduction <add>, %21, %cst_9 [2] : vector<4x16x16xf32> to vector<4x16xf32>
    %23 = vector.shape_cast %22 : vector<4x16xf32> to vector<4x16x1xf32>
    %24 = tpu.reciprocal %23 {approx = true} : vector<4x16x1xf32> -> vector<4x16x1xf32>
    %25 = vector.broadcast %24 : vector<4x16x1xf32> to vector<4x16x16xf32>
    %26 = arith.mulf %21, %25 : vector<4x16x16xf32>
    "tpu.trace_start"() <{level = 10 : i32, message = "hdk,hqk->hdq"}> : () -> ()
    %cst_10 = arith.constant dense<0.000000e+00> : vector<4x8x16xf32>
    %27 = tpu.matmul %11, %26, %cst_10 {dimension_numbers = #tpu.dot_dimension_numbers<[2], [2], [1], [1], [0, 0, 0, 1, 1, 1], [0], [0]>} : vector<4x8x16xf32>, vector<4x16x16xf32>, vector<4x8x16xf32> -> vector<4x8x16xf32>
    "tpu.trace_stop"() : () -> ()
    %28 = vector.shape_cast %27 : vector<4x8x16xf32> to vector<32x16xf32>
    %c0_11 = arith.constant 0 : index
    %c0_12 = arith.constant 0 : index
    %29 = vector.load %arg4[%c0_11, %c0_12] : memref<32x32xf32, #tpu.memory_space<vmem>>, vector<32x32xf32>
    %cst_13 = arith.constant dense<0.000000e+00> : vector<16x32xf32>
    %30 = tpu.matmul %28, %29, %cst_13 {dimension_numbers = #tpu.dot_dimension_numbers<[0], [0], [1], [1], [0, 1, 1, 1], [], []>} : vector<32x16xf32>, vector<32x32xf32>, vector<16x32xf32> -> vector<16x32xf32>
    %c0_14 = arith.constant 0 : index
    %c0_15 = arith.constant 0 : index
    %31 = vector.load %arg5[%c0_14, %c0_15] : memref<1x32xf32, #tpu.memory_space<vmem>>, vector<1x32xf32>
    %32 = vector.broadcast %31 : vector<1x32xf32> to vector<16x32xf32>
    %33 = arith.addf %30, %32 : vector<16x32xf32>
    %cst_16 = arith.constant dense<0xFF800000> : vector<16xf32>
    %34 = vector.multi_reduction <maximumf>, %33, %cst_16 [1] : vector<16x32xf32> to vector<16xf32>
    %35 = vector.shape_cast %34 : vector<16xf32> to vector<16x1xf32>
    %36 = vector.broadcast %35 : vector<16x1xf32> to vector<16x32xf32>
    %37 = arith.subf %33, %36 : vector<16x32xf32>
    %38 = math.exp %37 : vector<16x32xf32>
    %cst_17 = arith.constant dense<0.000000e+00> : vector<16xf32>
    %39 = vector.multi_reduction <add>, %38, %cst_17 [1] : vector<16x32xf32> to vector<16xf32>
    %40 = vector.shape_cast %39 : vector<16xf32> to vector<16x1xf32>
    %41 = tpu.reciprocal %40 : vector<16x1xf32> -> vector<16x1xf32>
    %42 = vector.broadcast %41 : vector<16x1xf32> to vector<16x32xf32>
    %43 = arith.mulf %38, %42 : vector<16x32xf32>
    %c0_18 = arith.constant 0 : index
    %c0_19 = arith.constant 0 : index
    %44 = vector.load %arg7[%c0_18, %c0_19] : memref<16x32xf32, #tpu.memory_space<vmem>>, vector<16x32xf32>
    tpu.vector_store %arg7[%c0_18, %c0_19], %43 {strides = array<i32>} : memref<16x32xf32, #tpu.memory_space<vmem>>, vector<16x32xf32>,
    return
  }
  func.func @transform_0(%arg0: i32) -> (i32, i32) {
    %c0_i32 = arith.constant 0 : i32
    %c0_i32_0 = arith.constant 0 : i32
    %c0_i32_1 = arith.constant 0 : i32
    return %c0_i32, %c0_i32_0 : i32, i32
  }
  func.func @transform_1(%arg0: i32) -> (i32, i32) {
    %c0_i32 = arith.constant 0 : i32
    %c0_i32_0 = arith.constant 0 : i32
    %c0_i32_1 = arith.constant 0 : i32
    return %c0_i32, %c0_i32_0 : i32, i32
  }
  func.func @transform_2(%arg0: i32) -> (i32, i32) {
    %c0_i32 = arith.constant 0 : i32
    %c0_i32_0 = arith.constant 0 : i32
    %c0_i32_1 = arith.constant 0 : i32
    return %c0_i32, %c0_i32_0 : i32, i32
  }
  func.func @transform_3(%arg0: i32) -> (i32, i32) {
    %c0_i32 = arith.constant 0 : i32
    %c0_i32_0 = arith.constant 0 : i32
    %c0_i32_1 = arith.constant 0 : i32
    return %c0_i32, %c0_i32_0 : i32, i32
  }
  func.func @transform_4(%arg0: i32) -> (i32, i32) {
    %c0_i32 = arith.constant 0 : i32
    %c0_i32_0 = arith.constant 0 : i32
    %c0_i32_1 = arith.constant 0 : i32
    return %c0_i32, %c0_i32_0 : i32, i32
  }
  func.func @transform_5(%arg0: i32) -> (i32, i32) {
    %c0_i32 = arith.constant 0 : i32
    %c0_i32_0 = arith.constant 0 : i32
    %c0_i32_1 = arith.constant 0 : i32
    return %c0_i32, %c0_i32_0 : i32, i32
  }
  func.func @transform_6(%arg0: i32) -> (i32, i32) {
    %c0_i32 = arith.constant 0 : i32
    %c0_i32_0 = arith.constant 0 : i32
    %c0_i32_1 = arith.constant 0 : i32
    return %c0_i32, %c0_i32_0 : i32, i32
  }
}

</mosaic_0001>

<bundles_post_ra>
// kernel: tpu_custom_call.1
= control target key start
LH: loop header
LB: loop body
LE: loop exit
PB: predicated region body
PF: predicated region fallthrough
CT: control target
= control target key end

     0   :  { %vm110_vm0 = vcmask 130048   ;;  %v1567_v5 = vmov 0   ;;  %s1796_s0 = inlined_call_operand.vmem [shape: f32[16,16], index: 0, kind: input, shape index: {}]   ;;  %s1797_s1 = inlined_call_operand.vmem [shape: f32[96,16], index: 1, kind: input, shape index: {}]   ;;  %s1798_s2 = inlined_call_operand.vmem [shape: f32[96,1], index: 2, kind: input, shape index: {}]   ;;  %s1799_s3 = inlined_call_operand.vmem [shape: f32[32,32], index: 3, kind: input, shape index: {}]   ;;  %s1800_s4 = inlined_call_operand.vmem [shape: f32[1,32], index: 4, kind: input, shape index: {}]   ;;  %s1801_s5 = inlined_call_operand.vmem [shape: f32[16,16], index: 5, kind: input, shape index: {}]   ;;  %s1802_s6 = inlined_call_operand.hbm [shape: f32[16,32], index: 6, kind: output, shape index: {}]  }
   0x1   :  { %v24_v0 = vld [vmem:[%s1796_s0] sm:$0xff]  ;;  %v25_v1 = vld [vmem:[%s1796_s0 + $0x8] sm:$0xff]  ;;  %vm1620_vm1 = vmpackc.low %vm110_vm0, %vm110_vm0  ;;  %1501 = vset.pattern.permute.xlu0 %v1567_v5  ;;  %1502 = vset.pattern.permute.xlu1 %v1567_v5 }
   0x2   :  { %v26_v2 = vld [vmem:[%s1797_s1] sm:$0xff]  ;;  %v1464_v3 = vpack.c.bf16 %v25_v1, %v24_v0  ;;  %v40_v7 = vld [vmem:[%s1798_s2 + $0x10] sm:$0xff]  ;;  %v39_v8 = vld [vmem:[%s1798_s2 + $0x8] sm:$0xff] }
   0x3   :  { %1387 = vmatprep.mubr.msk.f32.mxu0 %vm110_vm0, %v26_v2  ;;  %v38_v6 = vld [vmem:[%s1798_s2] sm:$0xff]  ;;  %62 = vperm.xlu1 %1502, %v40_v7   ;;  %v41_v9 = vld [vmem:[%s1798_s2 + $0x18] sm:$0xff] }
   0x4   :  { %1466 = vmatprep.subr.msk.bf16.mxu0 %vm1620_vm1, %v1464_v3  ;;  %52 = vperm.xlu0 %1501, %v38_v6  }
   0x5   :  { %1469 = vmatpush3.bf16.xpose.msk.msra.mxu0 %vm1620_vm1, %v1464_v3 }
   0x6   :  { %11 = vsyncpa [#allocation3], 0  ;;  %v27_v10 = vld [vmem:[%s1797_s1 + $0x8] sm:$0xff]  ;;  %v28_v11 = vld [vmem:[%s1797_s1 + $0x10] sm:$0xff]  ;;  %vm312_vm2 = vcmask 64512   ;;  %vm1569_vm3 = vmmov 0  }
   0x7   :  { %v42_v12 = vld [vmem:[%s1798_s2 + $0x20] sm:$0xff]  ;;  %67 = vperm.xlu1 %1502, %v41_v9   ;;  %v43_v13 = vld [vmem:[%s1798_s2 + $0x28] sm:$0xff]  ;;  %v29_v14 = vld [vmem:[%s1797_s1 + $0x18] sm:$0xff]  ;;  %vm1180_vm4 = vcmask 261120  }
   0x8   :  { %57 = vperm.xlu0 %1501, %v39_v8   ;;  %v30_v15 = vld [vmem:[%s1797_s1 + $0x20] sm:$0xff]  ;;  %v44_v16 = vld [vmem:[%s1798_s2 + $0x30] sm:$0xff]  ;;  %v45_v17 = vld [vmem:[%s1798_s2 + $0x38] sm:$0xff] }
   0x9   :  { %v31_v18 = vld [vmem:[%s1797_s1 + $0x28] sm:$0xff]  ;;  %v32_v19 = vld [vmem:[%s1797_s1 + $0x30] sm:$0xff]  ;;  %v33_v20 = vld [vmem:[%s1797_s1 + $0x38] sm:$0xff] }
   0xa   :  { %v34_v41 = vld [vmem:[%s1797_s1 + $0x40] sm:$0xff]  ;;  %v35_v42 = vld [vmem:[%s1797_s1 + $0x48] sm:$0xff]  ;;  %v36_v55 = vld [vmem:[%s1797_s1 + $0x50] sm:$0xff] }
   0xb   :  { %77 = vperm.xlu1 %1502, %v43_v13   ;;  %v37_v56 = vld [vmem:[%s1797_s1 + $0x58] sm:$0xff]  ;;  %v279_v57 = vld [vmem:[%s1801_s5 + $0x8] sm:$0xff]  ;;  %v278_v58 = vld [vmem:[%s1801_s5] sm:$0xff] }
   0xc   :  { %1388 = vmatmul.mubr.msk.f32.vlgmr.msra.gmra.mrb[0].mxu0 %vm110_vm0, %v27_v10  ;;  %72 = vperm.xlu0 %1501, %v42_v12  }
   0xd   :  { %1390 = vmatprep.mubr.msk.f32.mxu0 %vm110_vm0, %v28_v11 }
   0xf   :  { %87 = vperm.xlu1 %1502, %v45_v17  }
  0x10   :  { %1391 = vmatmul.mubr.msk.f32.gmra.mrb[2].mxu0 %vm110_vm0, %v29_v14  ;;  %82 = vperm.xlu0 %1501, %v44_v16  }
  0x11   :  { %1393 = vmatprep.mubr.msk.f32.mxu0 %vm110_vm0, %v30_v15 }
  0x14   :  { %1394 = vmatmul.mubr.msk.f32.gmra.mrb[4].mxu0 %vm110_vm0, %v31_v18 }
  0x15   :  { %1396 = vmatprep.mubr.msk.f32.mxu0 %vm110_vm0, %v32_v19 }
  0x18   :  { %1397 = vmatmul.mubr.msk.f32.gmra.mrb[6].mxu0 %vm110_vm0, %v33_v20  ;;  %v47_v20 = vld [vmem:[%s1798_s2 + $0x48] sm:$0xff] }
  0x19   :  { %1399 = vmatprep.mubr.msk.f32.mxu0 %vm110_vm0, %v34_v41 }
  0x1c   :  { %1400 = vmatmul.mubr.msk.f32.gmra.mrb[8].mxu0 %vm110_vm0, %v35_v42 }
  0x1d   :  { %1402 = vmatprep.mubr.msk.f32.mxu0 %vm110_vm0, %v36_v55 }
  0x20   :  { %1403 = vmatmul.mubr.msk.f32.gmra.mrb[10].mxu0 %vm110_vm0, %v37_v56 }
  0x82   :  { %v63_v22 = vpop.permute.xlu1 %62 }
  0x83   :  { %v53_v21 = vpop.permute.xlu0 %52 }
  0x86   :  { %v68_v29 = vpop.permute.xlu1 %67 }
  0x87   :  { %v58_v23 = vpop.permute.xlu0 %57 }
  0x8a   :  { %v78_v36 = vpop.permute.xlu1 %77 }
  0x8b   :  { %v73_v33 = vpop.permute.xlu0 %72 }
  0x8e   :  { %v88_v44 = vpop.permute.xlu1 %87 }
  0x8f   :  { %v83_v43 = vpop.permute.xlu0 %82 }
  0xdf   :  { %v1389_v24 = vpop.f32.mrb[0].mxu0 }
  0xe0   :  { %v225_v25 = vadd.f32 %v1389_v24, %v58_v23  ;;  %v219_v26 = vpop.f32.mrb[1].mxu0  ;;  %v46_v23 = vld [vmem:[%s1798_s2 + $0x40] sm:$0xff] }
  0xe1   :  { %v220_v27 = vadd.f32 %v219_v26, %v53_v21 }
  0xe2   :  { %394 = vxpose.xlu1.b32.start.end [1/1] (short) (narrow) %v225_v25, 16 }
  0xe3   :  { %280 = vxpose.xlu0.b32.start.end [1/1] (short) (narrow) %v220_v27, 16  ;;  %v1392_v28 = vpop.f32.mrb[2].mxu0 }
  0xe4   :  { %v229_v30 = vpop.f32.mrb[3].mxu0  ;;  %v235_v37 = vadd.f32 %v1392_v28, %v68_v29 }
  0xe5   :  { %v230_v31 = vadd.f32 %v229_v30, %v63_v22 }
  0xe7   :  { %v1395_v32 = vpop.f32.mrb[4].mxu0 }
  0xe8   :  { %v239_v34 = vpop.f32.mrb[5].mxu0  ;;  %507 = vxpose.xlu0.b32.start.end [1/1] (short) (narrow) %v230_v31, 16  ;;  %v245_v38 = vadd.f32 %v1395_v32, %v78_v36 }
  0xe9   :  { %v240_v35 = vadd.f32 %v239_v34, %v73_v33 }
  0xeb   :  { %v1398_v39 = vpop.f32.mrb[6].mxu0  ;;  %1405 = vmatprep.subr.mxu1 %v240_v35 }
  0xec   :  { %v249_v40 = vpop.f32.mrb[7].mxu0  ;;  %1406 = vmatpush3.msra.mxu1 %v240_v35  ;;  %v255_v51 = vadd.f32 %v1398_v39, %v88_v44 }
  0xed   :  { %620 = vxpose.xlu0.b32.start.end [1/1] (short) (narrow) %v235_v37, 16  ;;  %1410 = vmatprep.subr.mxu1 %v245_v38  ;;  %v250_v48 = vadd.f32 %v249_v40, %v83_v43 }
  0xef   :  { %v1722_v21 = vpop.f32.mrb[8].mxu0 }
  0xf0   :  { %v1724_v22 = vpop.f32.mrb[9].mxu0 }
 0x162   :  { %v410_v46 = vpop.trf.xlu1 }
 0x163   :  { %v296_v45 = vpop.trf.xlu0 }
 0x164   :  { %1407 = vmatprep.mubr.msk.f32.mxu1 %vm312_vm2, %v296_v45 }
 0x166   :  { %v411_v49 = vpop.trf.xlu1 }
 0x167   :  { %v297_v47 = vpop.trf.xlu0 }
 0x168   :  { %1408 = vmatmul.mubr.msk.f32.vlgmr.msra.gmra.mrb[0].mxu1 %vm312_vm2, %v297_v47 }
 0x169   :  { %1411 = vmatpush3.msra.mxu1 %v245_v38  ;;  %1412 = vmatprep.mubr.msk.f32.mxu1 %vm312_vm2, %v410_v46 }
 0x16a   :  { %1415 = vmatprep.subr.mxu1 %v250_v48 }
 0x16b   :  { %v523_v50 = vpop.trf.xlu0 }
 0x16c   :  { %1413 = vmatmul.mubr.msk.f32.vlgmr.msra.gmra.mrb[2].mxu1 %vm312_vm2, %v411_v49 }
 0x16d   :  { %1416 = vmatpush3.msra.mxu1 %v250_v48  ;;  %1417 = vmatprep.mubr.msk.f32.mxu1 %vm312_vm2, %v523_v50 }
 0x16e   :  { %1420 = vmatprep.subr.mxu1 %v255_v51 }
 0x16f   :  { %v524_v52 = vpop.trf.xlu0 }
 0x170   :  { %1418 = vmatmul.mubr.msk.f32.vlgmr.msra.gmra.mrb[4].mxu1 %vm312_vm2, %v524_v52 }
 0x171   :  { %1421 = vmatpush3.msra.mxu1 %v255_v51 }
 0x173   :  { %v636_v53 = vpop.trf.xlu0 }
 0x174   :  { %1422 = vmatprep.mubr.msk.f32.mxu1 %vm312_vm2, %v636_v53 }
 0x177   :  { %v637_v54 = vpop.trf.xlu0 }
 0x178   :  { %1423 = vmatmul.mubr.msk.f32.vlgmr.msra.gmra.mrb[6].mxu1 %vm312_vm2, %v637_v54 }
 0x23b   :  { %v1409_v59 = vpop.f32.mrb[0].mxu1 }
 0x23c   :  { %v391_v60 = vadd.f32 %v1409_v59, %v279_v57  ;;  %v385_v61 = vpop.f32.mrb[1].mxu1 }
 0x23d   :  { %v386_v62 = vadd.f32 %v385_v61, %v278_v58 }
 0x23e   :  { %v736_v63 = vsel %vm110_vm0, %v391_v60, -inf }
 0x23f   :  { %737 = vmax.xlane.f32.xlu1 %v736_v63  ;;  %v1414_v0 = vpop.f32.mrb[2].mxu1  ;;  %v733_v1 = vsel %vm110_vm0, %v386_v62, -inf }
 0x240   :  { %v504_v2 = vadd.f32 %v1414_v0, %v279_v57  ;;  %v498_v3 = vpop.f32.mrb[3].mxu1  ;;  %734 = vmax.xlane.f32.xlu0 %v733_v1  ;;  %v48_v0 = vld [vmem:[%s1798_s2 + $0x50] sm:$0xff]  ;;  %v1568_v1 = vmov 0.0|0.0  }
 0x241   :  { %v499_v5 = vadd.f32 %v498_v3, %v278_v58  ;;  %1470 = vmatprep.subr.bf16.mxu1 %v1568_v1  ;;  %1478 = vmatprep.subr.bf16.mxu0 %v1568_v1 }
 0x242   :  { %v742_v6 = vsel %vm110_vm0, %v504_v2, -inf }
 0x243   :  { %743 = vmax.xlane.f32.xlu1 %v742_v6  ;;  %v1419_v7 = vpop.f32.mrb[4].mxu1  ;;  %v739_v11 = vsel %vm110_vm0, %v499_v5, -inf  ;;  %v1570_v6 = vmov 0.0  }
 0x244   :  { %v611_v8 = vpop.f32.mrb[5].mxu1  ;;  %v617_v10 = vadd.f32 %v1419_v7, %v279_v57  ;;  %1429 = vmatprep.mubr.msk.f32.mxu1 %vm1569_vm3, %v1570_v6  ;;  %1443 = vmatprep.mubr.msk.f32.mxu0 %vm1569_vm3, %v1570_v6 }
 0x245   :  { %v612_v9 = vadd.f32 %v611_v8, %v278_v58 }
 0x246   :  { %v748_v13 = vsel %vm110_vm0, %v617_v10, -inf }
 0x247   :  { %740 = vmax.xlane.f32.xlu1 %v739_v11  ;;  %v745_v12 = vsel %vm110_vm0, %v612_v9, -inf }
 0x248   :  { %746 = vmax.xlane.f32.xlu0 %v745_v12 }
 0x24b   :  { %749 = vmax.xlane.f32.xlu1 %v748_v13  ;;  %v1424_v14 = vpop.f32.mrb[6].mxu1 }
 0x24c   :  { %v730_v15 = vadd.f32 %v1424_v14, %v279_v57  ;;  %v724_v16 = vpop.f32.mrb[7].mxu1 }
 0x24d   :  { %v725_v17 = vadd.f32 %v724_v16, %v278_v58 }
 0x24e   :  { %v754_v18 = vsel %vm110_vm0, %v730_v15, -inf }
 0x24f   :  { %755 = vmax.xlane.f32.xlu1 %v754_v18  ;;  %v751_v19 = vsel %vm110_vm0, %v725_v17, -inf }
 0x250   :  { %752 = vmax.xlane.f32.xlu0 %v751_v19 }
 0x260   :  { %97 = vperm.xlu1 %1502, %v47_v20  }
 0x266   :  { %92 = vperm.xlu0 %1501, %v46_v23  }
 0x2cc   :  { %v738_v24 = vpop.xlane.xlu1 %737 }
 0x2cd   :  { %v758_v25 = vsub.f32 %v391_v60, %v738_v24  ;;  %v735_v26 = vpop.xlane.xlu0 %734 }
 0x2ce   :  { %v757_v27 = vsub.f32 %v386_v62, %v735_v26 }
 0x2cf   :  { %v767_v28 = vmul.f32 1.442695, %v758_v25 }
 0x2d0   :  { %v765_v29 = vmul.f32 1.442695, %v757_v27  ;;  %v744_v30 = vpop.xlane.xlu1 %743 }
 0x2d1   :  { %1503 = vpow2.f32 %v767_v28  ;;  %v760_v31 = vsub.f32 %v504_v2, %v744_v30  ;;  %v1404_v2 = vpop.f32.mrb[10].mxu0 }
 0x2d2   :  { %1505 = vpow2.f32 %v765_v29  ;;  %v269_v3 = vpop.f32.mrb[11].mxu0 }
 0x2d3   :  { %v771_v32 = vmul.f32 1.442695, %v760_v31 }
 0x2d4   :  { %v741_v33 = vpop.xlane.xlu1 %740 }
 0x2d5   :  { %1507 = vpow2.f32 %v771_v32  ;;  %v759_v34 = vsub.f32 %v499_v5, %v741_v33  ;;  %v747_v35 = vpop.xlane.xlu0 %746  ;;  %v49_v5 = vld [vmem:[%s1798_s2 + $0x58] sm:$0xff] }
 0x2d6   :  { %v761_v36 = vsub.f32 %v612_v9, %v747_v35 }
 0x2d7   :  { %v769_v37 = vmul.f32 1.442695, %v759_v34 }
 0x2d8   :  { %v773_v38 = vmul.f32 1.442695, %v761_v36  ;;  %v750_v39 = vpop.xlane.xlu1 %749 }
 0x2d9   :  { %1509 = vpow2.f32 %v769_v37  ;;  %v762_v40 = vsub.f32 %v617_v10, %v750_v39 }
 0x2da   :  { %1511 = vpow2.f32 %v773_v38 }
 0x2db   :  { %v1504_v41 = vpop.eup %1503  ;;  %v775_v42 = vmul.f32 1.442695, %v762_v40 }
 0x2dc   :  { %v1506_v43 = vpop.eup %1505  ;;  %v756_v44 = vpop.xlane.xlu1 %755  ;;  %v784_v45 = vsel %vm110_vm0, %v1504_v41, 0.0 }
 0x2dd   :  { %1513 = vpow2.f32 %v775_v42  ;;  %v764_v46 = vsub.f32 %v730_v15, %v756_v44  ;;  %785 = vadd.xlane.f32.xlu1 %v784_v45  ;;  %v753_v47 = vpop.xlane.xlu0 %752  ;;  %v781_v48 = vsel %vm110_vm0, %v1506_v43, 0.0  ;;  %v1138_v44 = vld [vmem:[%s1799_s3 + $0x8] sm:$0xff] }
 0x2de   :  { %v763_v49 = vsub.f32 %v725_v17, %v753_v47  ;;  %782 = vadd.xlane.f32.xlu0 %v781_v48  ;;  %v1139_v47 = vld [vmem:[%s1799_s3 + $0x10] sm:$0xff]  ;;  %v1140_v48 = vld [vmem:[%s1799_s3 + $0x18] sm:$0xff] }
 0x2df   :  { %v1508_v50 = vpop.eup %1507  ;;  %v779_v51 = vmul.f32 1.442695, %v764_v46 }
 0x2e0   :  { %v777_v52 = vmul.f32 1.442695, %v763_v49  ;;  %v790_v53 = vsel %vm110_vm0, %v1508_v50, 0.0  ;;  %v98_v7 = vpop.permute.xlu1 %97  ;;  %v1490_v49 = vpack.c.bf16 %v1140_v48, %v1139_v47 }
 0x2e1   :  { %1515 = vpow2.f32 %v779_v51  ;;  %791 = vadd.xlane.f32.xlu1 %v790_v53 }
 0x2e2   :  { %1517 = vpow2.f32 %v777_v52 }
 0x2e3   :  { %v1510_v54 = vpop.eup %1509 }
 0x2e4   :  { %v787_v55 = vsel %vm110_vm0, %v1510_v54, 0.0  ;;  %v1512_v56 = vpop.eup %1511 }
 0x2e5   :  { %788 = vadd.xlane.f32.xlu0 %v787_v55  ;;  %v793_v59 = vsel %vm110_vm0, %v1512_v56, 0.0  ;;  %v93_v8 = vpop.permute.xlu0 %92 }
 0x2e6   :  { %v260_v28 = vadd.f32 %v1724_v22, %v93_v8  ;;  %v265_v22 = vadd.f32 %v1722_v21, %v98_v7  ;;  %v1137_v21 = vld [vmem:[%s1799_s3] sm:$0xff] }
 0x2e7   :  { %v1514_v57 = vpop.eup %1513  ;;  %v1486_v45 = vpack.c.bf16 %v1138_v44, %v1137_v21 }
 0x2e8   :  { %v796_v58 = vsel %vm110_vm0, %v1514_v57, 0.0 }
 0x2e9   :  { %797 = vadd.xlane.f32.xlu1 %v796_v58  ;;  %794 = vadd.xlane.f32.xlu0 %v793_v59  ;;  %v1336_v58 = vld [vmem:[%s1800_s4] ss:$0 sm:$0xff]  ;;  %s1571_s4 = smov [#allocation2]  }
 0x2ea   :  { %s1291_s8 = sshll.u32 %s1571_s4, 4  ;;  %s1292_s8 = int_to_ptr.vmem [resolvable:$true] %s1291_s8 }
 0x2eb   :  { %v1516_v60 = vpop.eup %1515  ;;  %s1543_s9 = scalar_lea.vmem %s1292_s8, 256  ;;  %p1548_p1 = scmp.lt.s32.totalorder %s1292_s8, %s1292_s8 }
 0x2ec   :  { %v1518_v61 = vpop.eup %1517  ;;  %v802_v62 = vsel %vm110_vm0, %v1516_v60, 0.0  ;;  %p1544_p0 = scmp.ne.s32.totalorder %s1292_s8, %s1543_s9  ;;  %p1549_p2 = scmp.lt.s32.totalorder %s1543_s9, %s1543_s9 }
 0x2ed   :  { %803 = vadd.xlane.f32.xlu1 %v802_v62  ;;  %v799_v63 = vsel %vm110_vm0, %v1518_v61, 0.0 }
 0x2ee   :  { %800 = vadd.xlane.f32.xlu0 %v799_v63  ;;  %p1550_p3 = por %p1549_p2, %p1548_p1 }
 0x2f0   :  { %p1551_p4 = pnand %p1550_p3, %p1544_p0 }
 0x2fe   :  { %102 = vperm.xlu1 %1502, %v48_v0  }
 0x304   :  { %107 = vperm.xlu0 %1501, %v49_v5  }
 0x36a   :  { %v786_v9 = vpop.xlane.xlu1 %785 }
 0x36b   :  { %1519 = vrcp.f32 %v786_v9  ;;  %v783_v10 = vpop.xlane.xlu0 %782 }
 0x36c   :  { %1521 = vrcp.f32 %v783_v10 }
 0x36e   :  { %v792_v11 = vpop.xlane.xlu1 %791 }
 0x36f   :  { %1523 = vrcp.f32 %v792_v11 }
 0x372   :  { %v789_v12 = vpop.xlane.xlu0 %788 }
 0x373   :  { %1525 = vrcp.f32 %v789_v12 }
 0x375   :  { %v1520_v13 = vpop.eup %1519 }
 0x376   :  { %v1522_v14 = vpop.eup %1521  ;;  %v814_v15 = vmul.f32 %v1520_v13, %v1504_v41  ;;  %v798_v16 = vpop.xlane.xlu1 %797 }
 0x377   :  { %v795_v17 = vpop.xlane.xlu0 %794  ;;  %v813_v18 = vmul.f32 %v1522_v14, %v1506_v43  ;;  %1527 = vrcp.f32 %v798_v16 }
 0x378   :  { %1529 = vrcp.f32 %v795_v17 }
 0x379   :  { %v1471_v19 = vpack.c.bf16 %v814_v15, %v813_v18  ;;  %v1524_v23 = vpop.eup %1523 }
 0x37a   :  { %v804_v20 = vpop.xlane.xlu1 %803  ;;  %v816_v26 = vmul.f32 %v1524_v23, %v1508_v50 }
 0x37b   :  { %1531 = vrcp.f32 %v804_v20  ;;  %1473 = vmatpush3.bf16.xpose.msk.msra.mxu1 %vm1620_vm1, %v1471_v19  ;;  %v801_v24 = vpop.xlane.xlu0 %800 }
 0x37c   :  { %1533 = vrcp.f32 %v801_v24  ;;  %1474 = vmatprep.subr.bf16.mxu1 %v1568_v1 }
 0x37d   :  { %v1526_v25 = vpop.eup %1525 }
 0x37e   :  { %v815_v27 = vmul.f32 %v1526_v25, %v1510_v54  ;;  %v103_v39 = vpop.permute.xlu1 %102 }
 0x37f   :  { %v270_v41 = vadd.f32 %v269_v3, %v103_v39 }
 0x380   :  { %v1475_v29 = vpack.c.bf16 %v816_v26, %v815_v27 }
 0x381   :  { %v1528_v30 = vpop.eup %1527 }
 0x382   :  { %v1530_v31 = vpop.eup %1529  ;;  %v818_v32 = vmul.f32 %v1528_v30, %v1514_v57  ;;  %1430 = vmatmul.mubr.msk.f32.vlgmr.msra.gmra.mrb[8].mxu1 %vm110_vm0, %v260_v28 }
 0x383   :  { %v817_v33 = vmul.f32 %v1530_v31, %v1512_v56  ;;  %1477 = vmatpush3.bf16.xpose.msk.msra.mxu1 %vm1620_vm1, %v1475_v29  ;;  %1436 = vmatprep.mubr.msk.f32.mxu1 %vm1569_vm3, %v1570_v6  ;;  %v108_v42 = vpop.permute.xlu0 %107 }
 0x384   :  { %1482 = vmatprep.subr.bf16.mxu1 %v1568_v1  ;;  %v275_v43 = vadd.f32 %v1404_v2, %v108_v42 }
 0x385   :  { %v1532_v34 = vpop.eup %1531  ;;  %v1479_v35 = vpack.c.bf16 %v818_v32, %v817_v33 }
 0x386   :  { %v1534_v36 = vpop.eup %1533  ;;  %v820_v37 = vmul.f32 %v1532_v34, %v1516_v60 }
 0x387   :  { %v819_v38 = vmul.f32 %v1534_v36, %v1518_v61  ;;  %1481 = vmatpush3.bf16.xpose.msk.msra.mxu0 %vm1620_vm1, %v1479_v35 }
 0x388   :  { %1487 = vmatprep.subr.bf16.mxu0 %v1486_v45 }
 0x389   :  { %v1483_v40 = vpack.c.bf16 %v820_v37, %v819_v38 }
 0x38a   :  { %1437 = vmatmul.mubr.msk.f32.vlgmr.msra.gmra.mrb[10].mxu1 %vm110_vm0, %v265_v22 }
 0x38b   :  { %1485 = vmatpush3.bf16.xpose.msk.msra.mxu1 %vm1620_vm1, %v1483_v40  ;;  %1450 = vmatprep.mubr.msk.f32.mxu1 %vm1569_vm3, %v1570_v6 }
 0x38e   :  { %1444 = vmatmul.mubr.msk.f32.vlgmr.msra.gmra.mrb[12].mxu0 %vm110_vm0, %v270_v41 }
 0x38f   :  { %1489 = vmatpush3.bf16.msra.mxu0 %v1486_v45 }
 0x390   :  { %1491 = vmatprep.subr.bf16.mxu0 %v1490_v49 }
 0x392   :  { %1451 = vmatmul.mubr.msk.f32.vlgmr.msra.gmra.mrb[12].mxu1 %vm110_vm0, %v275_v43 }
 0x393   :  { %1493 = vmatpush3.bf16.msra.mxu0 %v1490_v49 }
 0x455   :  { %v896_v4 = vpop.f32.mrb[8].mxu1 }
 0x456   :  { %1148 = vxpose.xlu1.b32.start [1/4] (short) (narrow) %v896_v4, 16  ;;  %v1431_v46 = vpop.f32.mrb[9].mxu1 }
 0x45d   :  { %v975_v50 = vpop.f32.mrb[10].mxu1 }
 0x45e   :  { %1149 = vxpose.xlu1.b32.cont [2/4] (short) (narrow) %v975_v50, 16  ;;  %v1438_v51 = vpop.f32.mrb[11].mxu1 }
 0x461   :  { %v1054_v52 = vpop.f32.mrb[12].mxu0 }
 0x462   :  { %v1445_v53 = vpop.f32.mrb[13].mxu0  ;;  %1150 = vxpose.xlu1.b32.cont [3/4] (short) (narrow) %v1054_v52, 16 }
 0x465   :  { %v1133_v54 = vpop.f32.mrb[12].mxu1 }
 0x466   :  { %1151 = vxpose.xlu1.b32.end [4/4] (short) (narrow) %v1133_v54, 16  ;;  %v1452_v55 = vpop.f32.mrb[13].mxu1 }
 0x4da   :  { %v1164_v56 = vpop.trf.xlu1 }
 0x4db   :  { %1461 = vmatprep.mubr.msk.f32.mxu0 %vm1180_vm4, %v1164_v56 }
 0x4de   :  { %v1165_v57 = vpop.trf.xlu1 }
 0x4df   :  { %1462 = vmatmul.mubr.msk.f32.vlgmr.msra.gmra.mrb[14].mxu0 %vm1180_vm4, %v1165_v57 }
 0x5b2   :  { %v1463_v59 = vpop.f32.mrb[14].mxu0 }
 0x5b3   :  { %v1253_v60 = vpop.f32.mrb[15].mxu0  ;;  %v1259_v62 = vadd.f32 %v1463_v59, %v1336_v58 }
 0x5b4   :  { %v1254_v61 = vadd.f32 %v1336_v58, %v1253_v60 }
 0x5b5   :  { %v1265_v0 = vsel %vm1180_vm4, %v1259_v62, -inf }
 0x5b6   :  { %v1262_v63 = vsel %vm1180_vm4, %v1254_v61, -inf }
 0x5b7   :  { %1263 = vmax.xlane.f32.xlu0 %v1262_v63 }
 0x5bb   :  { %1266 = vmax.xlane.f32.xlu0 %v1265_v0 }
 0x644   :  { %v1264_v1 = vpop.xlane.xlu0 %1263 }
 0x645   :  { %v1268_v2 = vsub.f32 %v1254_v61, %v1264_v1 }
 0x647   :  { %v1270_v3 = vmul.f32 1.442695, %v1268_v2 }
 0x648   :  { %v1267_v5 = vpop.xlane.xlu0 %1266 }
 0x649   :  { %1535 = vpow2.f32 %v1270_v3  ;;  %v1269_v6 = vsub.f32 %v1259_v62, %v1267_v5 }
 0x64b   :  { %v1272_v7 = vmul.f32 1.442695, %v1269_v6 }
 0x64d   :  { %1537 = vpow2.f32 %v1272_v7 }
 0x653   :  { %v1536_v8 = vpop.eup %1535 }
 0x654   :  { %v1274_v9 = vsel %vm1180_vm4, %v1536_v8, 0.0 }
 0x655   :  { %1275 = vadd.xlane.f32.xlu0 %v1274_v9 }
 0x657   :  { %v1538_v10 = vpop.eup %1537 }
 0x658   :  { %v1277_v11 = vsel %vm1180_vm4, %v1538_v10, 0.0 }
 0x659   :  { %1278 = vadd.xlane.f32.xlu0 %v1277_v11 }
 0x6e2   :  { %v1276_v12 = vpop.xlane.xlu0 %1275 }
 0x6e3   :  { %1539 = vrcp.f32 %v1276_v12 }
 0x6e6   :  { %v1279_v13 = vpop.xlane.xlu0 %1278 }
 0x6e7   :  { %1541 = vrcp.f32 %v1279_v13 }
 0x6ed   :  { %v1540_v14 = vpop.eup %1539 }
 0x6ee   :  { %v1282_v15 = vmul.f32 %v1540_v14, %v1536_v8 }
 0x6f0   :  { %1284 = vst.msk [vmem:[#allocation2] sm:$0xff] %vm1180_vm4, %v1282_v15 }
 0x6f1   :  { %v1542_v16 = vpop.eup %1541 }
 0x6f2   :  { %v1283_v17 = vmul.f32 %v1542_v16, %v1538_v10 }
 0x6f4   :  { %1285 = vst.msk [vmem:[#allocation2 + $0x8] sm:$0xff] %vm1180_vm4, %v1283_v17 }
 0x6f5   :  { %1554 = shalt.err (!%p1551_p4)
}
 0x6f6   :  { %s1555_s12 = scalar_lea.hbm %s1802_s6, 256 }
 0x6f7   :  { %p1556_p5 = scmp.ne.s32.totalorder %s1802_s6, %s1555_s12  ;;  %p1559_p6 = scmp.lt.u32.totalorder %s1555_s12, %s1802_s6 }
 0x6f9   :  { %p1561_p7 = pnand %p1559_p6, %p1556_p5 }
 0x6fb   :  { %1564 = shalt.err (!%p1561_p7)
}
 0x6fc   :  { %s1572_s17 = smov 128   ;;  %s1573_s18 = smov 8  }
 0x6fd   :  { %1297 = dma.vmem_to_hbm [thread:$0]  %s1292_s8, 256, %s1802_s6, [#allocation3], %s1572_s17, %s1572_s17, %s1573_s18  }
 0x6fe   :  { %1565 = dma.done.wait [#allocation3], 256  }
 0x6ff   :  { %1566 = vsyncadd [#allocation3], 4294967040 }
 0x700   :  { %1301 = vsyncpa [#allocation3], 1 }

</bundles_post_ra>
